<compile_context>
chip_gen: v7x
topology: tpu7x:2x2x1
jax: 0.10.0
libtpu: 0.0.40
codegen_flags: <defaults>
</compile_context>

<pallas_src>
import jax
import jax.numpy as jnp
from jax.experimental import pallas as pl
from jax.experimental.pallas import tpu as pltpu


OUT_DIM = 6   # true output width (Linear(256, 6))
OUT_PAD = 8   # padded output width; equals the out array's last dim (legal block)


def _round_up(x, m):
    return ((x + m - 1) // m) * m


def _mlp_kernel(x_ref, w1_ref, b1_ref, w2_ref, b2_ref, w3_ref, b3_ref, o_ref):
    # x arrives f32; cast to bf16 in-kernel (VPU work hidden under the MXU) so
    # HBM only carries the f32 input once.
    xb = x_ref[...].astype(jnp.bfloat16)

    # Layer 1: Linear(D, 512) + ReLU  (Dropout(0.3) = identity in eval mode).
    h1 = jnp.dot(xb, w1_ref[...], preferred_element_type=jnp.float32)
    h1 = jnp.maximum(h1 + b1_ref[...], 0.0)

    # Layer 2: Linear(512, 256) + ReLU (Dropout(0.3) = identity in eval mode).
    h2 = jnp.dot(h1.astype(jnp.bfloat16), w2_ref[...],
                 preferred_element_type=jnp.float32)
    h2 = jnp.maximum(h2 + b2_ref[...], 0.0)

    # Layer 3: Linear(256, 6), zero-padded to 8 output columns. Narrow (masked)
    # store, but 16x fewer HBM write bytes than a 128-lane f32 pad; result f32.
    out = jnp.dot(h2.astype(jnp.bfloat16), w3_ref[...],
                  preferred_element_type=jnp.float32)
    o_ref[...] = out + b3_ref[...]


def prepare_params(params):
    """One-time prep: bf16 weight copies + zero-padded last layer.

    Keeps weight casting/padding out of the steady-state per-forward path."""
    w3 = params["w3"].astype(jnp.bfloat16)
    b3 = params["b3"].astype(jnp.float32).reshape(1, -1)
    k3 = w3.shape[0]
    w3p = jnp.zeros((k3, OUT_PAD), jnp.bfloat16).at[:, :OUT_DIM].set(w3)
    b3p = jnp.zeros((1, OUT_PAD), jnp.float32).at[:, :OUT_DIM].set(b3)
    return {
        "w1": params["w1"].astype(jnp.bfloat16),
        "b1": params["b1"].astype(jnp.float32).reshape(1, -1),
        "w2": params["w2"].astype(jnp.bfloat16),
        "b2": params["b2"].astype(jnp.float32).reshape(1, -1),
        "w3p": w3p,
        "b3p": b3p,
    }


def _pick_batch_tile(B):
    if B <= 256:
        # Small batch: single grid step, rows rounded to 16 (bf16 sublane pack).
        return _round_up(B, 16)
    # Moderate/large batch: at least 2 grid steps so ("parallel",) shards both
    # v7x TensorCores; multiple of 256 keeps the MXU full; cap at 1024 so the
    # per-tile VMEM footprint (x tile + f32 h1/h2 temps + ~0.5 MiB weights)
    # stays a few MiB on every generation.
    return min(1024, _round_up(pl.cdiv(B, 2), 256))


def _gnss_mlp_forward(x, prep):
    """x: [B, D] float32. prep: output of prepare_params()."""
    B, D = x.shape
    tb = _pick_batch_tile(B)
    bp = _round_up(B, tb)
    if bp != B:
        x = jnp.pad(x, ((0, bp - B), (0, 0)))  # padded rows sliced off below

    resident = lambda a: pl.BlockSpec(a.shape, lambda i, _a=a: (0,) * _a.ndim)

    out = pl.pallas_call(
        _mlp_kernel,
        out_shape=jax.ShapeDtypeStruct((bp, OUT_PAD), jnp.float32),
        grid=(bp // tb,),
        in_specs=[
            pl.BlockSpec((tb, D), lambda i: (i, 0)),       # x: tiled over batch
            resident(prep["w1"]), resident(prep["b1"]),    # weights/biases resident
            resident(prep["w2"]), resident(prep["b2"]),
            resident(prep["w3p"]), resident(prep["b3p"]),
        ],
        out_specs=pl.BlockSpec((tb, OUT_PAD), lambda i: (i, 0)),
        compiler_params=pltpu.CompilerParams(
            dimension_semantics=("parallel",),  # batch tiles shard v7x's 2 TCs
        ),
    )(x, prep["w1"], prep["b1"], prep["w2"], prep["b2"],
      prep["w3p"], prep["b3p"])

    return out[:B, :OUT_DIM]


# jit so the pad, kernel and final [:B, :6] slice compile into one dispatch.
gnss_mlp_forward = jax.jit(_gnss_mlp_forward)


def init_params(key, input_dim):
    """Deterministic init mimicking PyTorch Linear default U(-1/sqrt(fan_in), +)."""
    keys = jax.random.split(key, 6)

    def linear(kw, kb, fan_in, fan_out):
        bound = 1.0 / jnp.sqrt(jnp.float32(fan_in))
        w = jax.random.uniform(kw, (fan_in, fan_out), jnp.float32, -bound, bound)
        b = jax.random.uniform(kb, (1, fan_out), jnp.float32, -bound, bound)
        return w, b

    w1, b1 = linear(keys[0], keys[1], input_dim, 512)
    w2, b2 = linear(keys[2], keys[3], 512, 256)
    w3, b3 = linear(keys[4], keys[5], 256, 6)
    return {"w1": w1, "b1": b1, "w2": w2, "b2": b2, "w3": w3, "b3": b3}


def _reference(x, p):
    # Same bf16-operand / f32-accumulate recipe as the kernel so the check is tight.
    xb = x.astype(jnp.bfloat16)
    w1 = p["w1"].astype(jnp.bfloat16)
    w2 = p["w2"].astype(jnp.bfloat16)
    w3 = p["w3"].astype(jnp.bfloat16)
    h1 = jnp.maximum(
        jnp.dot(xb, w1, preferred_element_type=jnp.float32) + p["b1"], 0.0)
    h2 = jnp.maximum(
        jnp.dot(h1.astype(jnp.bfloat16), w2, preferred_element_type=jnp.float32)
        + p["b2"], 0.0)
    return (jnp.dot(h2.astype(jnp.bfloat16), w3, preferred_element_type=jnp.float32)
            + p["b3"])


if __name__ == "__main__":
    key = jax.random.PRNGKey(0)
    k_x, k_p = jax.random.split(key)

    B, INPUT_DIM = 8, 32  # small deterministic example shapes
    x = jax.random.normal(k_x, (B, INPUT_DIM), jnp.float32)
    params = init_params(k_p, INPUT_DIM)
    prep = prepare_params(params)  # one-time weight prep (bf16 + padding)

    out = jax.block_until_ready(gnss_mlp_forward(x, prep))

    ref = _reference(x, params)
    assert out.shape == (B, OUT_DIM), out.shape
    assert jnp.allclose(out, ref, atol=1e-2, rtol=1e-2), float(
        jnp.max(jnp.abs(out - ref)))

    print("KERNEL_OK")
</pallas_src>

<mosaic_0001>
module attributes {stable_mosaic.version = 11 : i64} {
  func.func @_mlp_kernel(%arg0: i32, %arg1: memref<16x32xf32, #tpu.memory_space<vmem>>, %arg2: memref<32x512xbf16, #tpu.memory_space<vmem>>, %arg3: memref<1x512xf32, #tpu.memory_space<vmem>>, %arg4: memref<512x256xbf16, #tpu.memory_space<vmem>>, %arg5: memref<1x256xf32, #tpu.memory_space<vmem>>, %arg6: memref<256x8xbf16, #tpu.memory_space<vmem>>, %arg7: memref<1x8xf32, #tpu.memory_space<vmem>>, %arg8: memref<16x8xf32, #tpu.memory_space<vmem>>) attributes {dimension_semantics = [#tpu.dimension_semantics<parallel>], iteration_bounds = array<i64: 1>, scalar_prefetch = 0 : i64, scratch_operands = 0 : i64, tpu.core_type = #tpu.core_type<tc>, window_params = [{transform_indices = @transform_0, window_bounds = array<i64: 16, 32>}, {pipeline_mode = #tpu.pipeline_mode<synchronous>, transform_indices = @transform_1, window_bounds = array<i64: 32, 512>}, {pipeline_mode = #tpu.pipeline_mode<synchronous>, transform_indices = @transform_2, window_bounds = array<i64: 1, 512>}, {pipeline_mode = #tpu.pipeline_mode<synchronous>, transform_indices = @transform_3, window_bounds = array<i64: 512, 256>}, {pipeline_mode = #tpu.pipeline_mode<synchronous>, transform_indices = @transform_4, window_bounds = array<i64: 1, 256>}, {pipeline_mode = #tpu.pipeline_mode<synchronous>, transform_indices = @transform_5, window_bounds = array<i64: 256, 8>}, {pipeline_mode = #tpu.pipeline_mode<synchronous>, transform_indices = @transform_6, window_bounds = array<i64: 1, 8>}, {transform_indices = @transform_7, window_bounds = array<i64: 16, 8>}]} {
    %c0 = arith.constant 0 : index
    %c0_0 = arith.constant 0 : index
    %0 = vector.load %arg1[%c0, %c0_0] : memref<16x32xf32, #tpu.memory_space<vmem>>, vector<16x32xf32>
    %1 = arith.truncf %0 : vector<16x32xf32> to vector<16x32xbf16>
    %c0_1 = arith.constant 0 : index
    %c0_2 = arith.constant 0 : index
    %2 = vector.load %arg2[%c0_1, %c0_2] : memref<32x512xbf16, #tpu.memory_space<vmem>>, vector<32x512xbf16>
    %cst = arith.constant dense<0.000000e+00> : vector<16x512xf32>
    %3 = tpu.matmul %1, %2, %cst {dimension_numbers = #tpu.dot_dimension_numbers<[1], [0], [0], [1], [0, 0, 1, 1], [], []>} : vector<16x32xbf16>, vector<32x512xbf16>, vector<16x512xf32> -> vector<16x512xf32>
    %c0_3 = arith.constant 0 : index
    %c0_4 = arith.constant 0 : index
    %4 = vector.load %arg3[%c0_3, %c0_4] : memref<1x512xf32, #tpu.memory_space<vmem>>, vector<1x512xf32>
    %5 = vector.broadcast %4 : vector<1x512xf32> to vector<16x512xf32>
    %6 = arith.addf %3, %5 : vector<16x512xf32>
    %cst_5 = arith.constant 0.000000e+00 : f32
    %7 = vector.broadcast %cst_5 : f32 to vector<16x512xf32>
    %8 = arith.maximumf %6, %7 : vector<16x512xf32>
    %9 = arith.truncf %8 : vector<16x512xf32> to vector<16x512xbf16>
    %c0_6 = arith.constant 0 : index
    %c0_7 = arith.constant 0 : index
    %10 = vector.load %arg4[%c0_6, %c0_7] : memref<512x256xbf16, #tpu.memory_space<vmem>>, vector<512x256xbf16>
    %cst_8 = arith.constant dense<0.000000e+00> : vector<16x256xf32>
    %11 = tpu.matmul %9, %10, %cst_8 {dimension_numbers = #tpu.dot_dimension_numbers<[1], [0], [0], [1], [0, 0, 1, 1], [], []>} : vector<16x512xbf16>, vector<512x256xbf16>, vector<16x256xf32> -> vector<16x256xf32>
    %c0_9 = arith.constant 0 : index
    %c0_10 = arith.constant 0 : index
    %12 = vector.load %arg5[%c0_9, %c0_10] : memref<1x256xf32, #tpu.memory_space<vmem>>, vector<1x256xf32>
    %13 = vector.broadcast %12 : vector<1x256xf32> to vector<16x256xf32>
    %14 = arith.addf %11, %13 : vector<16x256xf32>
    %cst_11 = arith.constant 0.000000e+00 : f32
    %15 = vector.broadcast %cst_11 : f32 to vector<16x256xf32>
    %16 = arith.maximumf %14, %15 : vector<16x256xf32>
    %17 = arith.truncf %16 : vector<16x256xf32> to vector<16x256xbf16>
    %c0_12 = arith.constant 0 : index
    %c0_13 = arith.constant 0 : index
    %18 = vector.load %arg6[%c0_12, %c0_13] : memref<256x8xbf16, #tpu.memory_space<vmem>>, vector<256x8xbf16>
    %cst_14 = arith.constant dense<0.000000e+00> : vector<16x8xf32>
    %19 = tpu.matmul %17, %18, %cst_14 {dimension_numbers = #tpu.dot_dimension_numbers<[1], [0], [0], [1], [0, 0, 1, 1], [], []>} : vector<16x256xbf16>, vector<256x8xbf16>, vector<16x8xf32> -> vector<16x8xf32>
    %c0_15 = arith.constant 0 : index
    %c0_16 = arith.constant 0 : index
    %20 = vector.load %arg7[%c0_15, %c0_16] : memref<1x8xf32, #tpu.memory_space<vmem>>, vector<1x8xf32>
    %21 = vector.broadcast %20 : vector<1x8xf32> to vector<16x8xf32>
    %22 = arith.addf %19, %21 : vector<16x8xf32>
    %c0_17 = arith.constant 0 : index
    %c0_18 = arith.constant 0 : index
    %23 = vector.load %arg8[%c0_17, %c0_18] : memref<16x8xf32, #tpu.memory_space<vmem>>, vector<16x8xf32>
    tpu.vector_store %arg8[%c0_17, %c0_18], %22 {strides = array<i32>} : memref<16x8xf32, #tpu.memory_space<vmem>>, vector<16x8xf32>,
    return
  }
  func.func @transform_0(%arg0: i32) -> (i32, i32) {
    %c0_i32 = arith.constant 0 : i32
    %c0_i32_0 = arith.constant 0 : i32
    return %arg0, %c0_i32 : i32, i32
  }
  func.func @transform_1(%arg0: i32) -> (i32, i32) {
    %c0_i32 = arith.constant 0 : i32
    %c0_i32_0 = arith.constant 0 : i32
    %c0_i32_1 = arith.constant 0 : i32
    return %c0_i32, %c0_i32_0 : i32, i32
  }
  func.func @transform_2(%arg0: i32) -> (i32, i32) {
    %c0_i32 = arith.constant 0 : i32
    %c0_i32_0 = arith.constant 0 : i32
    %c0_i32_1 = arith.constant 0 : i32
    return %c0_i32, %c0_i32_0 : i32, i32
  }
  func.func @transform_3(%arg0: i32) -> (i32, i32) {
    %c0_i32 = arith.constant 0 : i32
    %c0_i32_0 = arith.constant 0 : i32
    %c0_i32_1 = arith.constant 0 : i32
    return %c0_i32, %c0_i32_0 : i32, i32
  }
  func.func @transform_4(%arg0: i32) -> (i32, i32) {
    %c0_i32 = arith.constant 0 : i32
    %c0_i32_0 = arith.constant 0 : i32
    %c0_i32_1 = arith.constant 0 : i32
    return %c0_i32, %c0_i32_0 : i32, i32
  }
  func.func @transform_5(%arg0: i32) -> (i32, i32) {
    %c0_i32 = arith.constant 0 : i32
    %c0_i32_0 = arith.constant 0 : i32
    %c0_i32_1 = arith.constant 0 : i32
    return %c0_i32, %c0_i32_0 : i32, i32
  }
  func.func @transform_6(%arg0: i32) -> (i32, i32) {
    %c0_i32 = arith.constant 0 : i32
    %c0_i32_0 = arith.constant 0 : i32
    %c0_i32_1 = arith.constant 0 : i32
    return %c0_i32, %c0_i32_0 : i32, i32
  }
  func.func @transform_7(%arg0: i32) -> (i32, i32) {
    %c0_i32 = arith.constant 0 : i32
    %c0_i32_0 = arith.constant 0 : i32
    return %arg0, %c0_i32 : i32, i32
  }
}

</mosaic_0001>

<bundles_post_ra>
// kernel: _gnss_mlp_forward.1
= control target key start
LH: loop header
LB: loop body
LE: loop exit
PB: predicated region body
PF: predicated region fallthrough
CT: control target
= control target key end

     0   :  { %12 = vsyncpa [#allocation3], 0  ;;  %s1161_s24 = smov [#allocation2]   ;;  %s1326_s0 = inlined_call_operand.vmem [shape: f32[16,32], index: 0, kind: input, shape index: {}]   ;;  %s1327_s1 = inlined_call_operand.vmem [shape: bf16[32,512], index: 1, kind: input, shape index: {}]   ;;  %s1328_s2 = inlined_call_operand.vmem [shape: f32[1,512], index: 2, kind: input, shape index: {}]   ;;  %s1329_s3 = inlined_call_operand.hbm [shape: bf16[512,256], index: 3, kind: input, shape index: {}]   ;;  %s1330_s4 = inlined_call_operand.vmem [shape: f32[1,256], index: 4, kind: input, shape index: {}]   ;;  %s1331_s5 = inlined_call_operand.vmem [shape: bf16[256,8], index: 5, kind: input, shape index: {}]   ;;  %s1332_s6 = inlined_call_operand.vmem [shape: f32[1,8], index: 6, kind: input, shape index: {}]   ;;  %s1333_s7 = inlined_call_operand.vmem [shape: f32[16,8], index: 7, kind: output, shape index: {}]  }
   0x1   :  { %s24_s25 = sshll.u32 %s1161_s24, 4  ;;  %s1137_s28 = scalar_lea.hbm %s1329_s3, 8192  ;;  %s25_s25 = int_to_ptr.vmem [resolvable:$true] %s24_s25 }
   0x2   :  { %p1138_p0 = scmp.ne.s32.totalorder %s1329_s3, %s1137_s28  ;;  %p1141_p1 = scmp.lt.u32.totalorder %s1137_s28, %s1329_s3 }
   0x4   :  { %p1143_p2 = pnand %p1141_p1, %p1138_p0 }
   0x6   :  { %1146 = shalt.err (!%p1143_p2)
}
   0x7   :  { %s1147_s10 = scalar_lea.vmem %s25_s25, 8192  ;;  %p1152_p4 = scmp.lt.s32.totalorder %s25_s25, %s25_s25 }
   0x8   :  { %p1148_p3 = scmp.ne.s32.totalorder %s25_s25, %s1147_s10  ;;  %p1153_p5 = scmp.lt.s32.totalorder %s1147_s10, %s1147_s10 }
   0xa   :  { %p1154_p6 = por %p1153_p5, %p1152_p4 }
   0xc   :  { %p1155_p7 = pnand %p1154_p6, %p1148_p3 }
   0xe   :  { %1158 = shalt.err (!%p1155_p7)
}
   0xf   :  { %s1162_s11 = smov 128   ;;  %s1163_s12 = smov 8  }
  0x10   :  { %30 = dma.hbm_to_vmem [thread:$0]  %s1329_s3, 8192, %s25_s25, [#allocation3], %s1162_s11, %s1162_s11, %s1163_s12  }
  0x11   :  { %1159 = dma.done.wait [#allocation3], 8192  }
  0x12   :  { %1160 = vsyncadd [#allocation3], 4294959104  ;;  %v1164_v0 = vmov 0   ;;  %v1013_v1 = vld [vmem:[%s1327_s1 + $0x4] ss:$16 sps:$4 sm:$0xff]   ;;  %v42_v6 = vld [vmem:[%s1326_s0 + $0x8] sm:$0xff] }
  0x13   :  { %150 = vmatprep.mubr.bf16.mxu0 %v1164_v0  ;;  %v1015_v2 = vld [vmem:[%s1327_s1] ss:$16 sps:$4 sm:$0xff]   ;;  %118 = vmatprep.subr.bf16.mxu0 %v1013_v1  ;;  %v1016_v3 = vld [vmem:[%s1327_s1 + $0x24] ss:$16 sps:$4 sm:$0xff]   ;;  %v1021_v7 = vld [vmem:[%s1327_s1 + $0xc] ss:$16 sps:$4 sm:$0xff]  }
  0x14   :  { %v1018_v4 = vld [vmem:[%s1327_s1 + $0x20] ss:$16 sps:$4 sm:$0xff]   ;;  %119 = vmatpush1.bf16.msra.mxu0 %v1015_v2  ;;  %v1019_v8 = vld [vmem:[%s1327_s1 + $0x8] ss:$16 sps:$4 sm:$0xff]   ;;  %v1025_v10 = vld [vmem:[#allocation2 + $0x4] ss:$8 sps:$4 sm:$0xff]  }
  0x15   :  { %v41_v5 = vld [vmem:[%s1326_s0] sm:$0xff]  ;;  %120 = vmatprep.subr.bf16.mxu0 %v1016_v3  ;;  %vm114_vm0 = vcmask 261120   ;;  %v1024_v12 = vld [vmem:[%s1327_s1 + $0x2c] ss:$16 sps:$4 sm:$0xff]   ;;  %612 = vmatprep.subr.bf16.mxu1 %v1025_v10  ;;  %v1030_v14 = vld [vmem:[#allocation2 + $0x10] ss:$8 sps:$4 sm:$0xff]  }
  0x16   :  { %v43_v9 = vpack.c.bf16 %v42_v6, %v41_v5  ;;  %v1027_v11 = vld [vmem:[#allocation2] ss:$8 sps:$4 sm:$0xff]   ;;  %v1028_v13 = vld [vmem:[#allocation2 + $0x14] ss:$8 sps:$4 sm:$0xff]   ;;  %v1031_v15 = vld [vmem:[#allocation2 + $0x24] ss:$8 sps:$4 sm:$0xff]  }
  0x17   :  { %613 = vmatpush1.bf16.msra.mxu1 %v1027_v11  ;;  %v1022_v16 = vld [vmem:[%s1327_s1 + $0x28] ss:$16 sps:$4 sm:$0xff]   ;;  %v1035_v17 = vld [vmem:[#allocation2 + $0x104] ss:$8 sps:$4 sm:$0xff]   ;;  %v1037_v19 = vld [vmem:[#allocation2 + $0x34] ss:$8 sps:$4 sm:$0xff]  }
  0x18   :  { %121 = vmatpush1.bf16.msra.mxu0 %v1018_v4  ;;  %614 = vmatprep.subr.bf16.mxu1 %v1028_v13  ;;  %v1036_v18 = vld [vmem:[#allocation2 + $0x20] ss:$8 sps:$4 sm:$0xff]   ;;  %v1041_v21 = vld [vmem:[#allocation2 + $0x114] ss:$8 sps:$4 sm:$0xff]   ;;  %v1042_v22 = vld [vmem:[#allocation2 + $0x30] ss:$8 sps:$4 sm:$0xff]   ;;  %v54_v13 = vlaneseq }
  0x19   :  { %161 = vmatprep.subr.bf16.mxu0 %v1021_v7  ;;  %v1033_v20 = vld [vmem:[#allocation2 + $0x100] ss:$8 sps:$4 sm:$0xff]   ;;  %v1043_v23 = vld [vmem:[#allocation2 + $0x44] ss:$8 sps:$4 sm:$0xff]   ;;  %v1039_v24 = vld [vmem:[#allocation2 + $0x110] ss:$8 sps:$4 sm:$0xff]  }
  0x1a   :  { %v1047_v25 = vld [vmem:[#allocation2 + $0x124] ss:$8 sps:$4 sm:$0xff]   ;;  %v1048_v26 = vld [vmem:[#allocation2 + $0x40] ss:$8 sps:$4 sm:$0xff]   ;;  %v1049_v27 = vld [vmem:[#allocation2 + $0x54] ss:$8 sps:$4 sm:$0xff]  }
  0x1b   :  { %896 = vmatmul.mubr.msk.bf16.vlgmr.msra.gmra.mrb[0].mxu0 %vm114_vm0, %v43_v9  ;;  %615 = vmatpush1.bf16.msra.mxu1 %v1030_v14  ;;  %v1045_v28 = vld [vmem:[#allocation2 + $0x120] ss:$8 sps:$4 sm:$0xff]   ;;  %v1053_v29 = vld [vmem:[#allocation2 + $0x134] ss:$8 sps:$4 sm:$0xff]   ;;  %v1054_v30 = vld [vmem:[#allocation2 + $0x50] ss:$8 sps:$4 sm:$0xff]  }
  0x1c   :  { %162 = vmatpush1.bf16.msra.mxu0 %v1019_v8  ;;  %193 = vmatprep.mubr.bf16.mxu0 %v1164_v0  ;;  %v1055_v31 = vld [vmem:[#allocation2 + $0x64] ss:$8 sps:$4 sm:$0xff]   ;;  %v1051_v32 = vld [vmem:[#allocation2 + $0x130] ss:$8 sps:$4 sm:$0xff]   ;;  %v1060_v34 = vld [vmem:[#allocation2 + $0x60] ss:$8 sps:$4 sm:$0xff]  }
  0x1d   :  { %163 = vmatprep.subr.bf16.mxu0 %v1024_v12  ;;  %616 = vmatprep.subr.bf16.mxu1 %v1031_v15  ;;  %v1059_v33 = vld [vmem:[#allocation2 + $0x144] ss:$8 sps:$4 sm:$0xff]   ;;  %v1061_v35 = vld [vmem:[#allocation2 + $0x74] ss:$8 sps:$4 sm:$0xff]   ;;  %v1057_v36 = vld [vmem:[#allocation2 + $0x140] ss:$8 sps:$4 sm:$0xff]  }
  0x1e   :  { %v1065_v37 = vld [vmem:[#allocation2 + $0x154] ss:$8 sps:$4 sm:$0xff]   ;;  %v1066_v38 = vld [vmem:[#allocation2 + $0x70] ss:$8 sps:$4 sm:$0xff]   ;;  %v1067_v39 = vld [vmem:[#allocation2 + $0x84] ss:$8 sps:$4 sm:$0xff]  }
  0x1f   :  { %617 = vmatpush1.bf16.msra.mxu1 %v1036_v18  ;;  %v1063_v40 = vld [vmem:[#allocation2 + $0x150] ss:$8 sps:$4 sm:$0xff]   ;;  %v1071_v41 = vld [vmem:[#allocation2 + $0x164] ss:$8 sps:$4 sm:$0xff]   ;;  %v1069_v42 = vld [vmem:[#allocation2 + $0x160] ss:$8 sps:$4 sm:$0xff]  }
  0x20   :  { %164 = vmatpush1.bf16.msra.mxu0 %v1022_v16  ;;  %618 = vmatprep.subr.bf16.mxu1 %v1037_v19  ;;  %v1072_v43 = vld [vmem:[#allocation2 + $0x80] ss:$8 sps:$4 sm:$0xff]   ;;  %v1073_v44 = vld [vmem:[#allocation2 + $0x94] ss:$8 sps:$4 sm:$0xff]   ;;  %v1078_v46 = vld [vmem:[#allocation2 + $0x90] ss:$8 sps:$4 sm:$0xff]  }
  0x21   :  { %655 = vmatprep.subr.bf16.mxu0 %v1035_v17  ;;  %v1077_v45 = vld [vmem:[#allocation2 + $0x174] ss:$8 sps:$4 sm:$0xff]   ;;  %v1079_v47 = vld [vmem:[#allocation2 + $0xa4] ss:$8 sps:$4 sm:$0xff]   ;;  %v1075_v48 = vld [vmem:[#allocation2 + $0x170] ss:$8 sps:$4 sm:$0xff]  }
  0x22   :  { %v1083_v49 = vld [vmem:[#allocation2 + $0x184] ss:$8 sps:$4 sm:$0xff]   ;;  %v1084_v50 = vld [vmem:[#allocation2 + $0xa0] ss:$8 sps:$4 sm:$0xff]   ;;  %v1085_v51 = vld [vmem:[#allocation2 + $0xb4] ss:$8 sps:$4 sm:$0xff]  }
  0x23   :  { %897 = vmatmul.mubr.msk.bf16.vlgmr.msra.gmra.mrb[4].mxu0 %vm114_vm0, %v43_v9  ;;  %619 = vmatpush1.bf16.msra.mxu1 %v1042_v22  ;;  %v1081_v52 = vld [vmem:[#allocation2 + $0x180] ss:$8 sps:$4 sm:$0xff]   ;;  %v1089_v53 = vld [vmem:[#allocation2 + $0x194] ss:$8 sps:$4 sm:$0xff]   ;;  %v1090_v54 = vld [vmem:[#allocation2 + $0xb0] ss:$8 sps:$4 sm:$0xff]  }
  0x24   :  { %656 = vmatpush1.bf16.msra.mxu0 %v1033_v20  ;;  %620 = vmatprep.subr.bf16.mxu1 %v1043_v23  ;;  %v1091_v55 = vld [vmem:[#allocation2 + $0xc4] ss:$8 sps:$4 sm:$0xff]   ;;  %v1087_v56 = vld [vmem:[#allocation2 + $0x190] ss:$8 sps:$4 sm:$0xff]   ;;  %v1096_v58 = vld [vmem:[#allocation2 + $0xc0] ss:$8 sps:$4 sm:$0xff]  }
  0x25   :  { %657 = vmatprep.subr.bf16.mxu0 %v1041_v21  ;;  %v1095_v57 = vld [vmem:[#allocation2 + $0x1a4] ss:$8 sps:$4 sm:$0xff]   ;;  %v1097_v59 = vld [vmem:[#allocation2 + $0xd4] ss:$8 sps:$4 sm:$0xff]   ;;  %v1093_v60 = vld [vmem:[#allocation2 + $0x1a0] ss:$8 sps:$4 sm:$0xff]  }
  0x26   :  { %v1101_v61 = vld [vmem:[#allocation2 + $0x1b4] ss:$8 sps:$4 sm:$0xff]   ;;  %v1099_v62 = vld [vmem:[#allocation2 + $0x1b0] ss:$8 sps:$4 sm:$0xff]   ;;  %v1103_v0 = vld [vmem:[#allocation2 + $0xe4] ss:$8 sps:$4 sm:$0xff]  }
  0x27   :  { %621 = vmatpush1.bf16.msra.mxu1 %v1048_v26  ;;  %v1102_v63 = vld [vmem:[#allocation2 + $0xd0] ss:$8 sps:$4 sm:$0xff]   ;;  %v1107_v1 = vld [vmem:[#allocation2 + $0x1c4] ss:$8 sps:$4 sm:$0xff]   ;;  %v1105_v2 = vld [vmem:[#allocation2 + $0x1c0] ss:$8 sps:$4 sm:$0xff]  }
  0x28   :  { %658 = vmatpush1.bf16.msra.mxu0 %v1039_v24  ;;  %622 = vmatprep.subr.bf16.mxu1 %v1049_v27  ;;  %v1108_v3 = vld [vmem:[#allocation2 + $0xe0] ss:$8 sps:$4 sm:$0xff]   ;;  %v1109_v4 = vld [vmem:[#allocation2 + $0xf4] ss:$8 sps:$4 sm:$0xff]   ;;  %v1111_v6 = vld [vmem:[#allocation2 + $0x1d0] ss:$8 sps:$4 sm:$0xff]  }
  0x29   :  { %659 = vmatprep.subr.bf16.mxu0 %v1047_v25  ;;  %v1113_v5 = vld [vmem:[#allocation2 + $0x1d4] ss:$8 sps:$4 sm:$0xff]   ;;  %v1114_v7 = vld [vmem:[#allocation2 + $0xf0] ss:$8 sps:$4 sm:$0xff]   ;;  %v1117_v8 = vld [vmem:[#allocation2 + $0x1e4] ss:$8 sps:$4 sm:$0xff]  }
  0x2a   :  { %v1115_v9 = vld [vmem:[#allocation2 + $0x1e0] ss:$8 sps:$4 sm:$0xff]   ;;  %v1120_v10 = vld [vmem:[#allocation2 + $0x1f4] ss:$8 sps:$4 sm:$0xff]   ;;  %v1118_v11 = vld [vmem:[#allocation2 + $0x1f0] ss:$8 sps:$4 sm:$0xff]  }
  0x2b   :  { %623 = vmatpush1.bf16.msra.mxu1 %v1054_v30  ;;  %v1121_v12 = vld [vmem:[%s1331_s5 + $0x40] sm:$0xff]   ;;  %v1252_v14 = vshrl.u32 %v54_v13, 7  ;;  %vm880_vm1 = vcmask 64512  }
  0x2c   :  { %660 = vmatpush1.bf16.msra.mxu0 %v1045_v28  ;;  %624 = vmatprep.subr.bf16.mxu1 %v1055_v31  ;;  %v52_v16 = vld [vmem:[%s1328_s2] sm:$0xf] }
  0x2d   :  { %661 = vmatprep.subr.bf16.mxu0 %v1053_v29  ;;  %v56_v15 = vsub.s32 0, %v1252_v14  ;;  %v60_v17 = vsub.s32 1, %v1252_v14  ;;  %v64_v23 = vsub.s32 2, %v1252_v14  ;;  %v68_v26 = vsub.s32 3, %v1252_v14 }
  0x2f   :  { %625 = vmatpush1.bf16.msra.mxu1 %v1060_v34  ;;  %v57_v18 = vrot.slane %v52_v16, %v56_v15  ;;  %v61_v19 = vrot.slane %v52_v16, %v60_v17 }
  0x30   :  { %662 = vmatpush1.bf16.msra.mxu0 %v1051_v32  ;;  %626 = vmatprep.subr.bf16.mxu1 %v1061_v35  ;;  %v65_v32 = vrot.slane %v52_v16, %v64_v23  ;;  %v69_v35 = vrot.slane %v52_v16, %v68_v26 }
  0x31   :  { %663 = vmatprep.subr.bf16.mxu0 %v1059_v33 }
  0x33   :  { %627 = vmatpush1.bf16.msra.mxu1 %v1066_v38 }
  0x34   :  { %664 = vmatpush1.bf16.msra.mxu0 %v1057_v36  ;;  %628 = vmatprep.subr.bf16.mxu1 %v1067_v39  ;;  %v1122_v39 = vld [vmem:[%s1331_s5] sm:$0xff]  }
  0x35   :  { %665 = vmatprep.subr.bf16.mxu0 %v1065_v37 }
  0x37   :  { %629 = vmatpush1.bf16.msra.mxu1 %v1072_v43 }
  0x38   :  { %666 = vmatpush1.bf16.msra.mxu0 %v1063_v40  ;;  %630 = vmatprep.subr.bf16.mxu1 %v1073_v44 }
  0x39   :  { %667 = vmatprep.subr.bf16.mxu0 %v1071_v41 }
  0x3b   :  { %631 = vmatpush1.bf16.msra.mxu1 %v1078_v46 }
  0x3c   :  { %668 = vmatpush1.bf16.msra.mxu0 %v1069_v42  ;;  %632 = vmatprep.subr.bf16.mxu1 %v1079_v47  ;;  %v1123_v42 = vld [vmem:[%s1331_s5 + $0x48] sm:$0xff]  }
  0x3d   :  { %669 = vmatprep.subr.bf16.mxu0 %v1077_v45 }
  0x3f   :  { %633 = vmatpush1.bf16.msra.mxu1 %v1084_v50 }
  0x40   :  { %670 = vmatpush1.bf16.msra.mxu0 %v1075_v48  ;;  %634 = vmatprep.subr.bf16.mxu1 %v1085_v51  ;;  %v1124_v48 = vld [vmem:[%s1331_s5 + $0x8] sm:$0xff]   ;;  %v1125_v51 = vld [vmem:[%s1331_s5 + $0x50] sm:$0xff]  }
  0x41   :  { %671 = vmatprep.subr.bf16.mxu0 %v1083_v49 }
  0x43   :  { %635 = vmatpush1.bf16.msra.mxu1 %v1090_v54 }
  0x44   :  { %672 = vmatpush1.bf16.msra.mxu0 %v1081_v52  ;;  %636 = vmatprep.subr.bf16.mxu1 %v1091_v55 }
  0x45   :  { %673 = vmatprep.subr.bf16.mxu0 %v1089_v53 }
  0x47   :  { %637 = vmatpush1.bf16.msra.mxu1 %v1096_v58  ;;  %v1128_v58 = vld [vmem:[%s1331_s5 + $0x18] sm:$0xff]  }
  0x48   :  { %674 = vmatpush1.bf16.msra.mxu0 %v1087_v56  ;;  %638 = vmatprep.subr.bf16.mxu1 %v1097_v59  ;;  %v1126_v56 = vld [vmem:[%s1331_s5 + $0x10] sm:$0xff]   ;;  %v1129_v59 = vld [vmem:[%s1331_s5 + $0x60] sm:$0xff]  }
  0x49   :  { %675 = vmatprep.subr.bf16.mxu0 %v1095_v57  ;;  %v1127_v57 = vld [vmem:[%s1331_s5 + $0x58] sm:$0xff]  }
  0x4b   :  { %639 = vmatpush1.bf16.msra.mxu1 %v1102_v63  ;;  %v1133_v63 = vld [vmem:[%s1331_s5 + $0x70] sm:$0xff]  }
  0x4c   :  { %676 = vmatpush1.bf16.msra.mxu0 %v1093_v60  ;;  %640 = vmatprep.subr.bf16.mxu1 %v1103_v0  ;;  %v1130_v60 = vld [vmem:[%s1331_s5 + $0x20] sm:$0xff]   ;;  %v1134_v0 = vld [vmem:[%s1331_s5 + $0x30] sm:$0xff]  }
  0x4d   :  { %677 = vmatprep.subr.bf16.mxu0 %v1101_v61  ;;  %v1131_v61 = vld [vmem:[%s1331_s5 + $0x68] sm:$0xff]  }
  0x4f   :  { %641 = vmatpush1.bf16.msra.mxu1 %v1108_v3  ;;  %v280_v3 = vld [vmem:[%s1330_s4] sm:$0x3] }
  0x50   :  { %678 = vmatpush1.bf16.msra.mxu0 %v1099_v62  ;;  %642 = vmatprep.subr.bf16.mxu1 %v1109_v4  ;;  %v1132_v62 = vld [vmem:[%s1331_s5 + $0x28] sm:$0xff]  }
  0x51   :  { %679 = vmatprep.subr.bf16.mxu0 %v1107_v1  ;;  %v1135_v1 = vld [vmem:[%s1331_s5 + $0x78] sm:$0xff]  }
  0x53   :  { %643 = vmatpush1.bf16.msra.mxu1 %v1114_v7  ;;  %v285_v7 = vrot.slane %v280_v3, %v56_v15 }
  0x54   :  { %680 = vmatpush1.bf16.msra.mxu0 %v1105_v2  ;;  %979 = vmatprep.subr.bf16.mxu1 %v1121_v12  ;;  %v1136_v2 = vld [vmem:[%s1331_s5 + $0x38] sm:$0xff]  }
  0x55   :  { %681 = vmatprep.subr.bf16.mxu0 %v1113_v5 }
  0x58   :  { %682 = vmatpush1.bf16.msra.mxu0 %v1111_v6 }
  0x59   :  { %683 = vmatprep.subr.bf16.mxu0 %v1117_v8 }
  0x5c   :  { %684 = vmatpush1.bf16.msra.mxu0 %v1115_v9  ;;  %v289_v9 = vrot.slane %v280_v3, %v60_v17  ;;  %v962_v17 = vld [vmem:[%s1332_s6] ss:$0 sm:$0xff] }
  0x5d   :  { %685 = vmatprep.subr.bf16.mxu0 %v1120_v10 }
  0x60   :  { %686 = vmatpush1.bf16.msra.mxu0 %v1118_v11 }
  0xee   :  { %v152_v20 = vpop.f32.mrb[0].mxu0 }
  0xef   :  { %v153_v21 = vadd.f32 %v152_v20, %v57_v18  ;;  %v154_v22 = vpop.f32.mrb[1].mxu0 }
  0xf0   :  { %v155_v24 = vadd.f32 %v154_v22, %v61_v19  ;;  %v156_v25 = vpop.f32.mrb[2].mxu0 }
  0xf1   :  { %v157_v27 = vadd.f32 %v156_v25, %v57_v18  ;;  %v158_v28 = vpop.f32.mrb[3].mxu0  ;;  %v204_v30 = vmax.f32 %v153_v21, 0.0 }
  0xf2   :  { %v159_v29 = vadd.f32 %v158_v28, %v61_v19  ;;  %v205_v33 = vmax.f32 %v155_v24, 0.0 }
  0xf3   :  { %v208_v31 = vmax.f32 %v157_v27, 0.0 }
  0xf4   :  { %v209_v34 = vmax.f32 %v159_v29, 0.0 }
  0xf5   :  { %v212_v36 = vpack.c.bf16 %v208_v31, %v204_v30 }
  0xf6   :  { %v195_v37 = vpop.f32.mrb[4].mxu0  ;;  %v213_v38 = vpack.c.bf16 %v209_v34, %v205_v33 }
  0xf7   :  { %v196_v40 = vadd.f32 %v195_v37, %v65_v32  ;;  %v197_v41 = vpop.f32.mrb[5].mxu0 }
  0xf8   :  { %v198_v43 = vadd.f32 %v197_v41, %v69_v35  ;;  %v199_v44 = vpop.f32.mrb[6].mxu0  ;;  %644 = vmatprep.mubr.bf16.mxu1 %v213_v38 }
  0xf9   :  { %v200_v45 = vadd.f32 %v199_v44, %v65_v32  ;;  %v201_v46 = vpop.f32.mrb[7].mxu0  ;;  %645 = vmatmul.mubr.bf16.vlgmr.msra.gmra.mrb[0].mxu1 %v212_v36  ;;  %v206_v49 = vmax.f32 %v196_v40, 0.0 }
  0xfa   :  { %v202_v47 = vadd.f32 %v201_v46, %v69_v35  ;;  %980 = vmatpush3.bf16.msra.mxu1 %v1122_v39  ;;  %v207_v52 = vmax.f32 %v198_v43, 0.0 }
  0xfb   :  { %v210_v50 = vmax.f32 %v200_v45, 0.0  ;;  %981 = vmatprep.subr.bf16.mxu1 %v1123_v42 }
  0xfc   :  { %v211_v53 = vmax.f32 %v202_v47, 0.0 }
  0xfd   :  { %v214_v54 = vpack.c.bf16 %v210_v50, %v206_v49 }
  0xfe   :  { %v215_v55 = vpack.c.bf16 %v211_v53, %v207_v52  ;;  %982 = vmatpush3.bf16.msra.mxu1 %v1124_v48 }
  0xff   :  { %983 = vmatprep.subr.bf16.mxu1 %v1125_v51 }
 0x100   :  { %687 = vmatprep.mubr.bf16.mxu0 %v215_v55 }
 0x101   :  { %688 = vmatmul.mubr.bf16.vlgmr.msra.gmra.mrb[8].mxu0 %v214_v54 }
 0x102   :  { %984 = vmatpush3.bf16.msra.mxu1 %v1126_v56 }
 0x103   :  { %985 = vmatprep.subr.bf16.mxu1 %v1127_v57 }
 0x106   :  { %986 = vmatpush3.bf16.msra.mxu1 %v1128_v58 }
 0x107   :  { %987 = vmatprep.subr.bf16.mxu1 %v1129_v59 }
 0x10a   :  { %988 = vmatpush3.bf16.msra.mxu1 %v1130_v60 }
 0x10b   :  { %989 = vmatprep.subr.bf16.mxu1 %v1131_v61 }
 0x10e   :  { %990 = vmatpush3.bf16.msra.mxu1 %v1132_v62 }
 0x10f   :  { %991 = vmatprep.subr.bf16.mxu1 %v1133_v63 }
 0x112   :  { %992 = vmatpush3.bf16.msra.mxu1 %v1134_v0 }
 0x113   :  { %993 = vmatprep.subr.bf16.mxu1 %v1135_v1 }
 0x116   :  { %994 = vmatpush3.bf16.msra.mxu1 %v1136_v2 }
 0x1cc   :  { %v646_v4 = vpop.f32.mrb[0].mxu1 }
 0x1cd   :  { %v648_v5 = vpop.f32.mrb[1].mxu1  ;;  %v647_v10 = vadd.f32 %v646_v4, %v285_v7 }
 0x1ce   :  { %v650_v6 = vpop.f32.mrb[2].mxu1  ;;  %v649_v11 = vadd.f32 %v648_v5, %v289_v9 }
 0x1cf   :  { %v652_v8 = vpop.f32.mrb[3].mxu1  ;;  %v651_v13 = vadd.f32 %v650_v6, %v285_v7 }
 0x1d0   :  { %v653_v19 = vadd.f32 %v652_v8, %v289_v9 }
 0x1d4   :  { %v689_v12 = vpop.f32.mrb[8].mxu0 }
 0x1d5   :  { %v690_v16 = vadd.f32 %v689_v12, %v647_v10  ;;  %v691_v18 = vpop.f32.mrb[9].mxu0 }
 0x1d6   :  { %v692_v20 = vadd.f32 %v691_v18, %v649_v11  ;;  %v693_v21 = vpop.f32.mrb[10].mxu0 }
 0x1d7   :  { %v694_v22 = vadd.f32 %v693_v21, %v651_v13  ;;  %v695_v23 = vpop.f32.mrb[11].mxu0  ;;  %v698_v25 = vmax.f32 %v690_v16, 0.0 }
 0x1d8   :  { %v696_v24 = vadd.f32 %v695_v23, %v653_v19  ;;  %v699_v27 = vmax.f32 %v692_v20, 0.0 }
 0x1d9   :  { %v700_v26 = vmax.f32 %v694_v22, 0.0 }
 0x1da   :  { %v701_v15 = vmax.f32 %v696_v24, 0.0 }
 0x1db   :  { %v702_v28 = vpack.c.bf16 %v700_v26, %v698_v25 }
 0x1dc   :  { %v703_v29 = vpack.c.bf16 %v701_v15, %v699_v27 }
 0x1de   :  { %871 = vmatprep.mubr.bf16.mxu1 %v703_v29 }
 0x1df   :  { %872 = vmatmul.mubr.bf16.vlgmr.msra.gmra.mrb[4].mxu1 %v702_v28 }
 0x2b2   :  { %v995_v14 = vpop.f32.mrb[4].mxu1 }
 0x2b3   :  { %v996_v30 = vpop.f32.mrb[5].mxu1 }
 0x2b4   :  { %v997_v31 = vadd.f32 %v996_v30, %v995_v14  ;;  %v998_v32 = vpop.f32.mrb[6].mxu1 }
 0x2b5   :  { %v999_v33 = vpop.f32.mrb[7].mxu1 }
 0x2b6   :  { %v874_v34 = vadd.f32 %v997_v31, %v962_v17  ;;  %v1000_v35 = vadd.f32 %v999_v33, %v998_v32 }
 0x2b8   :  { %881 = vst.msk [vmem:[%s1333_s7] sm:$0xff] %vm880_vm1, %v874_v34  ;;  %v877_v36 = vadd.f32 %v1000_v35, %v962_v17 }
 0x2ba   :  { %882 = vst.msk [vmem:[%s1333_s7 + $0x8] sm:$0xff] %vm880_vm1, %v877_v36 }
 0x2bb   :  { %887 = vsyncpa [#allocation3], 1 }

</bundles_post_ra>
